<compile_context>
chip_gen: v7x
topology: tpu7x:2x2x1
jax: 0.10.0
libtpu: 0.0.40
codegen_flags: <defaults>
</compile_context>

<pallas_src>
import jax
import jax.numpy as jnp
import numpy as np
from jax import lax
from jax.experimental import pallas as pl
from jax.experimental.pallas import tpu as pltpu

LEAKY_SLOPE = 0.1
_HALO = 128                          # lead / trail halo block width (lanes)


def _round_up(v, m):
    return -(-v // m) * m


def _cdiv(a, b):
    return -(-a // b)


def _vmem_capacity_bytes():
    try:
        info = pltpu.get_tpu_info()
        cap = getattr(info, "vmem_capacity_bytes", None)
        if cap:
            return int(cap)
    except Exception:
        pass
    return 64 * 1024 * 1024          # v7x per-TensorCore size (most restrictive)


_VMEM_CAP = _vmem_capacity_bytes()
_VMEM_LIMIT_BYTES = min(max(int(0.75 * _VMEM_CAP), 48 * 1024 * 1024),
                        96 * 1024 * 1024)
_TILE_BUDGET_BYTES = min(int(0.50 * _VMEM_CAP), 40 * 1024 * 1024)


def _choose_t_tile(c_in, c_out, t_out, batch, *, n_phase_out=1,
                   with_residual=False):
    """Lane-dense (multiple-of-128) time-tile size.

    Counts the double-buffered main input / output / residual blocks, the
    window scratch and the f32 accumulator + live intermediate, and keeps the
    total within a conservative share of VMEM (v7x: 64 MiB / TensorCore).
    Also keeps >= 4 (batch, time) grid cells when possible so both v7x
    TensorCores (and the software pipeline) have work.
    """
    per_col = 0
    per_col += 2 * 2 * c_in                       # x main block, double-buffered bf16
    per_col += 2 * 2 * c_out * n_phase_out        # output block, double-buffered bf16
    if with_residual:
        per_col += 2 * 2 * c_out                  # residual block, double-buffered bf16
    per_col += 2 * c_in                           # window scratch (bf16)
    per_col += 4 * c_out * 2                      # f32 accumulator + live intermediate
    per_col += 2 * c_out                          # bf16 intermediate
    tile = (_TILE_BUDGET_BYTES // max(per_col, 1)) // _HALO * _HALO
    tile = max(_HALO, min(2048, tile))
    t_need = _round_up(max(t_out, 1), _HALO)
    tile = min(tile, t_need)
    min_cells = 4                                 # feed both v7x TCs + pipeline
    if batch < min_cells:
        want_tiles = _cdiv(min_cells, max(batch, 1))
        tile = min(tile, _round_up(_cdiv(t_need, want_tiles), _HALO))
    return max(_HALO, tile)


# ----------------------------------------------------------------------------
# In-kernel helper: stage the LeakyReLU'd, position-masked halo window into a
# VMEM scratch (replaces both the per-conv jnp.pad in HBM and the in-kernel
# concatenate + where temp).
# ----------------------------------------------------------------------------
def _stage_window(win_ref, xl_ref, xm_ref, xt_ref, t_idx, t_tile, valid_len):
    def put(lo, width, piece, base):
        pos = base + lax.broadcasted_iota(jnp.int32, (1, width), 1)
        ok = (pos >= 0) & (pos < valid_len)
        v = jnp.where(piece >= 0, piece, LEAKY_SLOPE * piece)      # LeakyReLU
        win_ref[:, lo:lo + width] = jnp.where(ok, v, 0).astype(win_ref.dtype)

    base = t_idx * t_tile
    put(0, _HALO, xl_ref[0], base - _HALO)                         # lead halo
    put(_HALO, t_tile, xm_ref[0], base)                            # main tile
    put(_HALO + t_tile, _HALO, xt_ref[0], base + t_tile)           # trail halo


# ----------------------------------------------------------------------------
# Fused conv chain: out = conv_n(leaky(...conv_1(leaky(x))...)) + bias_i (+res)
# All intermediates stay in VMEM; one HBM write per ResBlock (chain).
# ----------------------------------------------------------------------------
def _make_chain_kernel(stage_meta, t_tile, t_valid, with_residual):
    """stage_meta: tuple of (K, dilation, pad_left) per stage (static)."""
    n = len(stage_meta)
    ext_l = [0] * n                  # pads of later stages (left extension)
    ext_r = [0] * n                  # right halos of later stages
    for i in range(n - 2, -1, -1):
        K, d, p = stage_meta[i + 1]
        ext_l[i] = ext_l[i + 1] + p
        ext_r[i] = ext_r[i + 1] + (d * (K - 1) - p)

    def kernel(*refs):
        xl_ref, xm_ref, xt_ref = refs[:3]
        wb = refs[3:3 + 2 * n]
        nxt = 3 + 2 * n
        r_ref = refs[nxt] if with_residual else None
        o_ref = refs[nxt + (1 if with_residual else 0)]
        win_ref = refs[-1]

        t_idx = pl.program_id(1)
        _stage_window(win_ref, xl_ref, xm_ref, xt_ref, t_idx, t_tile, t_valid)
        cur = win_ref[...]                       # (C0, t_tile + 256), bf16
        cur_start = -_HALO                       # pos of cur[:, 0] rel. tile origin

        for i in range(n):
            K, d, p = stage_meta[i]
            w_ref, b_ref = wb[2 * i], wb[2 * i + 1]
            out_start = -ext_l[i]
            width = t_tile + ext_l[i] + ext_r[i]
            off0 = (out_start - cur_start) - p
            # Tap 0 also folds in the bias (no zeros init).
            acc = jnp.dot(w_ref[0], cur[:, off0:off0 + width],
                          preferred_element_type=jnp.float32) + b_ref[...]
            for k in range(1, K):                # static taps
                o = off0 + k * d
                acc = acc + jnp.dot(w_ref[k], cur[:, o:o + width],
                                    preferred_element_type=jnp.float32)
            if i < n - 1:
                # Next conv's input: LeakyReLU, zero outside [0, t_valid)
                # (this is the 'same'-padding contract of the next conv).
                pos = t_idx * t_tile + out_start + lax.broadcasted_iota(
                    jnp.int32, (1, width), 1)
                acc = jnp.where(acc >= 0, acc, LEAKY_SLOPE * acc)
                cur = jnp.where((pos >= 0) & (pos < t_valid), acc,
                                0.0).astype(jnp.bfloat16)
                cur_start = out_start
            else:
                if r_ref is not None:
                    acc = acc + r_ref[0].astype(jnp.float32)
                # Re-establish the canonical layout (zero tail beyond t_valid).
                pos = t_idx * t_tile + lax.broadcasted_iota(
                    jnp.int32, (1, t_tile), 1)
                acc = jnp.where(pos < t_valid, acc, 0.0)
                o_ref[0] = acc.astype(o_ref.dtype)

    return kernel


def chain_conv1d(x_can, stages, *, t_out, t_tile, residual=None,
                 out_dtype=jnp.bfloat16):
    """Apply a chain of Sequential(LeakyReLU, Conv1d(padding='same')) stages to
    a canonical activation (B, C, t_full) with zeroed tail; optionally add
    `residual` to the final conv.  stages: list of
    (w_koi (K, C_out, C_in) bf16, bias (C_out, 1) f32, dilation, pad_left)."""
    B, C0, t_full = x_can.shape
    assert t_full % t_tile == 0 and t_tile % _HALO == 0
    n_t = t_full // t_tile
    tpb = t_tile // _HALO
    n128 = t_full // _HALO

    stage_meta = tuple((int(w.shape[0]), int(d), int(p))
                       for (w, _, d, p) in stages)
    pad_sum = sum(p for (_, _, p) in stage_meta)
    hr_sum = sum(d * (K - 1) - p for (K, d, p) in stage_meta)
    assert pad_sum <= _HALO and hr_sum <= _HALO, "combined halo exceeds 128"
    C_last = stages[-1][0].shape[1]

    in_specs = [
        pl.BlockSpec((1, C0, _HALO),
                     lambda b, t: (b, 0, jnp.maximum(t * tpb - 1, 0))),
        pl.BlockSpec((1, C0, t_tile), lambda b, t: (b, 0, t)),
        pl.BlockSpec((1, C0, _HALO),
                     lambda b, t: (b, 0, jnp.minimum((t + 1) * tpb, n128 - 1))),
    ]
    args = [x_can, x_can, x_can]
    for (w, bias, _, _) in stages:
        in_specs.append(pl.BlockSpec(w.shape, lambda b, t: (0, 0, 0)))
        in_specs.append(pl.BlockSpec(bias.shape, lambda b, t: (0, 0)))
        args += [w, bias]
    if residual is not None:
        in_specs.append(pl.BlockSpec((1, C_last, t_tile), lambda b, t: (b, 0, t)))
        args.append(residual.astype(out_dtype))

    return pl.pallas_call(
        _make_chain_kernel(stage_meta, t_tile, t_out, residual is not None),
        out_shape=jax.ShapeDtypeStruct((B, C_last, t_full), out_dtype),
        grid=(B, n_t),
        in_specs=in_specs,
        out_specs=pl.BlockSpec((1, C_last, t_tile), lambda b, t: (b, 0, t)),
        scratch_shapes=[pltpu.VMEM((C0, t_tile + 2 * _HALO), x_can.dtype)],
        compiler_params=pltpu.CompilerParams(
            dimension_semantics=("parallel", "parallel"),
            vmem_limit_bytes=_VMEM_LIMIT_BYTES),
    )(*args)


# ----------------------------------------------------------------------------
# LeakyReLU + ConvTranspose1d as a single merged polyphase kernel.
# ----------------------------------------------------------------------------
def _make_up_kernel(phase_meta, t_tile, t_in_valid):
    """phase_meta: tuple of (n_taps, d_max) per output phase (static)."""
    def kernel(xl_ref, xm_ref, xt_ref, w_ref, b_ref, o_ref, win_ref):
        t_idx = pl.program_id(1)
        _stage_window(win_ref, xl_ref, xm_ref, xt_ref, t_idx, t_tile, t_in_valid)
        xw = win_ref[...]                         # (C_in, t_tile + 256), bf16
        for r, (n_taps, d_max) in enumerate(phase_meta):
            off0 = _HALO - d_max
            acc = jnp.dot(w_ref[r, 0], xw[:, off0:off0 + t_tile],
                          preferred_element_type=jnp.float32) + b_ref[...]
            for k in range(1, n_taps):
                acc = acc + jnp.dot(w_ref[r, k],
                                    xw[:, off0 + k:off0 + k + t_tile],
                                    preferred_element_type=jnp.float32)
            o_ref[0, r] = acc.astype(o_ref.dtype)
    return kernel


def _up_out_len(T_in, up):
    return (T_in - 1) * up["stride"] - 2 * up["pad"] + up["K_u"]


def upsample_polyphase(x, up, *, act_dtype=jnp.bfloat16):
    """All s polyphase streams from one pallas_call (x staged/activated once).
    Returns the interleaved output (length >= T_out) plus T_out."""
    B, C_in, T_in = x.shape
    s, C_out = up["stride"], up["C_out"]
    phase_meta = up["phase_meta"]
    T_out = _up_out_len(T_in, up)
    T_q = _cdiv(T_out, s)                         # per-phase output length

    t_tile = _choose_t_tile(C_in, C_out, T_q, B, n_phase_out=s)
    n_t = _cdiv(T_q, t_tile)
    t_full = n_t * t_tile
    assert t_full >= T_in
    tpb = t_tile // _HALO
    n128 = t_full // _HALO

    x_can = jnp.pad(x.astype(act_dtype), ((0, 0), (0, 0), (0, t_full - T_in)))
    w_stack, bias = up["w_stack"], up["bias"]

    y4 = pl.pallas_call(
        _make_up_kernel(phase_meta, t_tile, T_in),
        out_shape=jax.ShapeDtypeStruct((B, s, C_out, t_full), act_dtype),
        grid=(B, n_t),
        in_specs=[
            pl.BlockSpec((1, C_in, _HALO),
                         lambda b, t: (b, 0, jnp.maximum(t * tpb - 1, 0))),
            pl.BlockSpec((1, C_in, t_tile), lambda b, t: (b, 0, t)),
            pl.BlockSpec((1, C_in, _HALO),
                         lambda b, t: (b, 0, jnp.minimum((t + 1) * tpb,
                                                         n128 - 1))),
            pl.BlockSpec(w_stack.shape, lambda b, t: (0, 0, 0, 0)),
            pl.BlockSpec(bias.shape, lambda b, t: (0, 0)),
        ],
        out_specs=pl.BlockSpec((1, s, C_out, t_tile), lambda b, t: (b, 0, 0, t)),
        scratch_shapes=[pltpu.VMEM((C_in, t_tile + 2 * _HALO), act_dtype)],
        compiler_params=pltpu.CompilerParams(
            dimension_semantics=("parallel", "parallel"),
            vmem_limit_bytes=_VMEM_LIMIT_BYTES),
    )(x_can, x_can, x_can, w_stack, bias)

    # Interleave the s phase streams: y[b, c, q*s + r] = y4[b, r, c, q]
    # (single XLA transpose pass; the s separate conv calls + stack are gone).
    y = jnp.transpose(y4, (0, 2, 3, 1)).reshape(B, C_out, t_full * s)
    return y, T_out


# ----------------------------------------------------------------------------
# One-time parameter preparation (weight re-layout / polyphase split / casts)
# ----------------------------------------------------------------------------
def prepare_params(params, D_r, dtype=jnp.bfloat16):
    prep = {}
    wt, bt = params["up"]                     # torch layout: (C_in, C_out, K_u)
    C_in, C_out, K_u = wt.shape
    s = K_u // 2
    p = K_u // 4
    assert s >= 1
    # Polyphase split of ConvTranspose1d: out[q*s + r] = sum_d x[q-d] W[., ., d*s+r+p]
    phase_meta, phase_ws = [], []
    for r in range(s):
        d_min = -((r + p) // s)                       # ceil(-(r+p)/s)
        d_max = (K_u - 1 - r - p) // s                # floor((K_u-1-r-p)/s)
        taps = [(d_max - k) * s + r + p for k in range(d_max - d_min + 1)]
        w_ph = jnp.transpose(wt[:, :, np.asarray(taps)], (2, 1, 0)).astype(dtype)
        phase_meta.append((len(taps), int(d_max)))
        phase_ws.append(w_ph)
    K_max = max(m[0] for m in phase_meta)
    w_stack = jnp.stack([jnp.pad(w, ((0, K_max - w.shape[0]), (0, 0), (0, 0)))
                         for w in phase_ws])          # (s, K_max, C_out, C_in)
    prep["up"] = {
        "w_stack": w_stack,
        "bias": bt.reshape(C_out, 1).astype(jnp.float32),
        "phase_meta": tuple(phase_meta),
        "stride": s, "K_u": K_u, "pad": p, "C_out": C_out,
    }
    mrf = []
    for blk_params, dils in zip(params["mrf"], D_r):
        blk = []
        for (w, b), d in zip(blk_params, dils):
            K = w.shape[-1]
            pad_left = (int(d) * (K - 1)) // 2
            blk.append((jnp.transpose(w, (2, 0, 1)).astype(dtype),   # (K, C, C)
                        b.reshape(-1, 1).astype(jnp.float32),
                        int(d), pad_left))
        mrf.append(blk)
    prep["mrf"] = mrf
    return prep


def _split_chains(blk, halo_limit=_HALO):
    """Greedily group consecutive convs of a ResBlock into chains whose
    combined left/right halos fit the 128-lane halo blocks."""
    chains, cur, p_sum, hr_sum = [], [], 0, 0
    for st in blk:
        w, _, d, p = st
        hr = d * (w.shape[0] - 1) - p
        assert p <= halo_limit and hr <= halo_limit, "dilation*(K-1) too large"
        if cur and (p_sum + p > halo_limit or hr_sum + hr > halo_limit):
            chains.append(cur)
            cur, p_sum, hr_sum = [], 0, 0
        cur.append(st)
        p_sum += p
        hr_sum += hr
    if cur:
        chains.append(cur)
    return chains


# ----------------------------------------------------------------------------
# MiddleBlock forward built from the Pallas kernels
# ----------------------------------------------------------------------------
def middle_block_forward(x, prep, act_dtype=jnp.bfloat16):
    up = prep["up"]
    C = up["C_out"]
    B = x.shape[0]

    # --- LeakyReLU + ConvTranspose1d (merged polyphase kernel) --------------
    y_il, T_out = upsample_polyphase(x, up, act_dtype=act_dtype)

    # --- canonical tile-aligned layout for the whole MRF stack --------------
    t_tile = _choose_t_tile(C, C, T_out, B, with_residual=True)
    t_full = _cdiv(T_out, t_tile) * t_tile
    y = jnp.pad(y_il[:, :, :T_out], ((0, 0), (0, 0), (0, t_full - T_out)))

    # --- MRF: y = y + resblock_i(y); each ResBlock runs as one fused chain --
    for blk in prep["mrf"]:
        chains = _split_chains(blk)
        h = y
        for ci, chain in enumerate(chains):
            res = y if ci == len(chains) - 1 else None
            h = chain_conv1d(h, chain, t_out=T_out, t_tile=t_tile,
                             residual=res, out_dtype=act_dtype)
        y = h
    return y[:, :, :T_out]


# ----------------------------------------------------------------------------
# Pure-JAX (lax, float32) reference mirroring the PyTorch module semantics
# ----------------------------------------------------------------------------
def _leaky(x):
    return jnp.where(x >= 0, x, LEAKY_SLOPE * x)


def reference_forward(x, params, D_r):
    wt, bt = params["up"]
    K_u = wt.shape[2]
    s = K_u // 2
    p = K_u // 4
    h = _leaky(x)
    w_conv = jnp.flip(jnp.transpose(wt, (1, 0, 2)), axis=2)
    y = lax.conv_general_dilated(
        h, w_conv, window_strides=(1,),
        padding=[(K_u - 1 - p, K_u - 1 - p)],
        lhs_dilation=(s,),
        dimension_numbers=("NCH", "OIH", "NCH")) + bt[None, :, None]
    for blk_params, dils in zip(params["mrf"], D_r):
        h = y
        for (w, b), d in zip(blk_params, dils):
            K = w.shape[-1]
            total = d * (K - 1)
            pd = total // 2
            h = lax.conv_general_dilated(
                _leaky(h), w, window_strides=(1,),
                padding=[(pd, total - pd)], rhs_dilation=(d,),
                dimension_numbers=("NCH", "OIH", "NCH")) + b[None, :, None]
        y = y + h
    return y


# ----------------------------------------------------------------------------
def init_params(key, channels, k_u_l, k_r, D_r):
    c2 = channels // 2
    keys = jax.random.split(key, 2 + 2 * sum(len(d) for d in D_r))
    ki = iter(range(len(keys)))
    params = {}
    # ConvTranspose1d weight layout (C_in, C_out, K)
    params["up"] = (
        0.1 * jax.random.normal(keys[next(ki)], (channels, c2, k_u_l), jnp.float32),
        0.1 * jax.random.normal(keys[next(ki)], (c2,), jnp.float32),
    )
    mrf = []
    for i, dils in enumerate(D_r):
        blk = []
        for _ in dils:
            w = 0.1 * jax.random.normal(keys[next(ki)], (c2, c2, k_r[i]), jnp.float32)
            b = 0.1 * jax.random.normal(keys[next(ki)], (c2,), jnp.float32)
            blk.append((w, b))
        mrf.append(blk)
    params["mrf"] = mrf
    return params


if __name__ == "__main__":
    # Small, module-consistent config
    batch, channels, T = 2, 16, 16
    k_u_l = 4                       # stride = 2, padding = 1
    k_r = [3, 5]
    D_r = [[1, 3], [1, 3]]

    key = jax.random.PRNGKey(0)
    kx, kp = jax.random.split(key)
    x = jax.random.normal(kx, (batch, channels, T), jnp.float32)
    params = init_params(kp, channels, k_u_l, k_r, D_r)
    prep = prepare_params(params, D_r)

    out = jax.block_until_ready(middle_block_forward(x, prep))
    ref = jax.block_until_ready(reference_forward(x, params, D_r))

    s, p = k_u_l // 2, k_u_l // 4
    T_out = (T - 1) * s - 2 * p + k_u_l
    assert out.shape == (batch, channels // 2, T_out), out.shape
    # bf16 activations/weights (f32 accumulation) vs. the f32 reference.
    np.testing.assert_allclose(np.asarray(out.astype(jnp.float32)),
                               np.asarray(ref), rtol=5e-2, atol=5e-2)
    print("KERNEL_OK")
</pallas_src>

<mosaic_0001>
module attributes {stable_mosaic.version = 11 : i64} {
  func.func @kernel(%arg0: i32, %arg1: i32, %arg2: memref<1x16x128xbf16, #tpu.memory_space<vmem>>, %arg3: memref<1x16x128xbf16, #tpu.memory_space<vmem>>, %arg4: memref<1x16x128xbf16, #tpu.memory_space<vmem>>, %arg5: memref<2x2x8x16xbf16, #tpu.memory_space<vmem>>, %arg6: memref<8x1xf32, #tpu.memory_space<vmem>>, %arg7: memref<1x2x8x128xbf16, #tpu.memory_space<vmem>>, %arg8: memref<16x384xbf16, #tpu.memory_space<vmem>>) attributes {dimension_semantics = [#tpu.dimension_semantics<parallel>, #tpu.dimension_semantics<parallel>], iteration_bounds = array<i64: 2, 1>, scalar_prefetch = 0 : i64, scratch_operands = 1 : i64, tpu.core_type = #tpu.core_type<tc>, window_params = [{transform_indices = @transform_0, window_bounds = array<i64: 1, 16, 128>}, {transform_indices = @transform_1, window_bounds = array<i64: 1, 16, 128>}, {transform_indices = @transform_2, window_bounds = array<i64: 1, 16, 128>}, {pipeline_mode = #tpu.pipeline_mode<synchronous>, transform_indices = @transform_3, window_bounds = array<i64: 2, 2, 8, 16>}, {pipeline_mode = #tpu.pipeline_mode<synchronous>, transform_indices = @transform_4, window_bounds = array<i64: 8, 1>}, {transform_indices = @transform_5, window_bounds = array<i64: 1, 2, 8, 128>}]} {
    %c128_i32 = arith.constant 128 : i32
    %0 = arith.muli %arg1, %c128_i32 : i32
    %c0 = arith.constant 0 : index
    %c0_0 = arith.constant 0 : index
    %c0_1 = arith.constant 0 : index
    %1 = vector.load %arg2[%c0, %c0_0, %c0_1] : memref<1x16x128xbf16, #tpu.memory_space<vmem>>, vector<1x16x128xbf16>
    %2 = vector.shape_cast %1 : vector<1x16x128xbf16> to vector<16x128xbf16>
    %c128_i32_2 = arith.constant 128 : i32
    %3 = arith.subi %0, %c128_i32_2 : i32
    %4 = tpu.iota {dimensions = array<i32: 1>} : vector<1x128xi32>
    %5 = vector.broadcast %3 : i32 to vector<1x128xi32>
    %6 = arith.addi %5, %4 : vector<1x128xi32>
    %c0_i32 = arith.constant 0 : i32
    %7 = vector.broadcast %c0_i32 : i32 to vector<1x128xi32>
    %8 = arith.cmpi sge, %6, %7 : vector<1x128xi32>
    %c16_i32 = arith.constant 16 : i32
    %9 = vector.broadcast %c16_i32 : i32 to vector<1x128xi32>
    %10 = arith.cmpi slt, %6, %9 : vector<1x128xi32>
    %11 = arith.andi %8, %10 : vector<1x128xi1>
    %cst = arith.constant 0.000000e+00 : bf16
    %12 = vector.broadcast %cst : bf16 to vector<16x128xbf16>
    %13 = arith.cmpf oge, %2, %12 : vector<16x128xbf16>
    %cst_3 = arith.constant 1.000980e-01 : bf16
    %14 = vector.broadcast %cst_3 : bf16 to vector<16x128xbf16>
    %15 = arith.mulf %14, %2 : vector<16x128xbf16>
    %16 = arith.select %13, %2, %15 : vector<16x128xi1>, vector<16x128xbf16>
    %c0_i32_4 = arith.constant 0 : i32
    %17 = arith.sitofp %c0_i32_4 : i32 to bf16
    %18 = vector.shape_cast %11 : vector<1x128xi1> to vector<1x128xi1>
    %19 = vector.broadcast %18 : vector<1x128xi1> to vector<16x128xi1>
    %20 = vector.broadcast %17 : bf16 to vector<16x128xbf16>
    %21 = arith.select %19, %16, %20 : vector<16x128xi1>, vector<16x128xbf16>
    %c0_5 = arith.constant 0 : index
    %c0_6 = arith.constant 0 : index
    %22 = vector.load %arg8[%c0_5, %c0_6] : memref<16x384xbf16, #tpu.memory_space<vmem>>, vector<16x128xbf16>
    tpu.vector_store %arg8[%c0_5, %c0_6], %21 {strides = array<i32>} : memref<16x384xbf16, #tpu.memory_space<vmem>>, vector<16x128xbf16>,
    %c0_7 = arith.constant 0 : index
    %c0_8 = arith.constant 0 : index
    %c0_9 = arith.constant 0 : index
    %23 = vector.load %arg3[%c0_7, %c0_8, %c0_9] : memref<1x16x128xbf16, #tpu.memory_space<vmem>>, vector<1x16x128xbf16>
    %24 = vector.shape_cast %23 : vector<1x16x128xbf16> to vector<16x128xbf16>
    %25 = tpu.iota {dimensions = array<i32: 1>} : vector<1x128xi32>
    %26 = vector.broadcast %0 : i32 to vector<1x128xi32>
    %27 = arith.addi %26, %25 : vector<1x128xi32>
    %c0_i32_10 = arith.constant 0 : i32
    %28 = vector.broadcast %c0_i32_10 : i32 to vector<1x128xi32>
    %29 = arith.cmpi sge, %27, %28 : vector<1x128xi32>
    %c16_i32_11 = arith.constant 16 : i32
    %30 = vector.broadcast %c16_i32_11 : i32 to vector<1x128xi32>
    %31 = arith.cmpi slt, %27, %30 : vector<1x128xi32>
    %32 = arith.andi %29, %31 : vector<1x128xi1>
    %cst_12 = arith.constant 0.000000e+00 : bf16
    %33 = vector.broadcast %cst_12 : bf16 to vector<16x128xbf16>
    %34 = arith.cmpf oge, %24, %33 : vector<16x128xbf16>
    %cst_13 = arith.constant 1.000980e-01 : bf16
    %35 = vector.broadcast %cst_13 : bf16 to vector<16x128xbf16>
    %36 = arith.mulf %35, %24 : vector<16x128xbf16>
    %37 = arith.select %34, %24, %36 : vector<16x128xi1>, vector<16x128xbf16>
    %c0_i32_14 = arith.constant 0 : i32
    %38 = arith.sitofp %c0_i32_14 : i32 to bf16
    %39 = vector.shape_cast %32 : vector<1x128xi1> to vector<1x128xi1>
    %40 = vector.broadcast %39 : vector<1x128xi1> to vector<16x128xi1>
    %41 = vector.broadcast %38 : bf16 to vector<16x128xbf16>
    %42 = arith.select %40, %37, %41 : vector<16x128xi1>, vector<16x128xbf16>
    %c0_15 = arith.constant 0 : index
    %c128 = arith.constant 128 : index
    %43 = vector.load %arg8[%c0_15, %c128] : memref<16x384xbf16, #tpu.memory_space<vmem>>, vector<16x128xbf16>
    tpu.vector_store %arg8[%c0_15, %c128], %42 {strides = array<i32>} : memref<16x384xbf16, #tpu.memory_space<vmem>>, vector<16x128xbf16>,
    %c0_16 = arith.constant 0 : index
    %c0_17 = arith.constant 0 : index
    %c0_18 = arith.constant 0 : index
    %44 = vector.load %arg4[%c0_16, %c0_17, %c0_18] : memref<1x16x128xbf16, #tpu.memory_space<vmem>>, vector<1x16x128xbf16>
    %45 = vector.shape_cast %44 : vector<1x16x128xbf16> to vector<16x128xbf16>
    %c128_i32_19 = arith.constant 128 : i32
    %46 = arith.addi %0, %c128_i32_19 : i32
    %47 = tpu.iota {dimensions = array<i32: 1>} : vector<1x128xi32>
    %48 = vector.broadcast %46 : i32 to vector<1x128xi32>
    %49 = arith.addi %48, %47 : vector<1x128xi32>
    %c0_i32_20 = arith.constant 0 : i32
    %50 = vector.broadcast %c0_i32_20 : i32 to vector<1x128xi32>
    %51 = arith.cmpi sge, %49, %50 : vector<1x128xi32>
    %c16_i32_21 = arith.constant 16 : i32
    %52 = vector.broadcast %c16_i32_21 : i32 to vector<1x128xi32>
    %53 = arith.cmpi slt, %49, %52 : vector<1x128xi32>
    %54 = arith.andi %51, %53 : vector<1x128xi1>
    %cst_22 = arith.constant 0.000000e+00 : bf16
    %55 = vector.broadcast %cst_22 : bf16 to vector<16x128xbf16>
    %56 = arith.cmpf oge, %45, %55 : vector<16x128xbf16>
    %cst_23 = arith.constant 1.000980e-01 : bf16
    %57 = vector.broadcast %cst_23 : bf16 to vector<16x128xbf16>
    %58 = arith.mulf %57, %45 : vector<16x128xbf16>
    %59 = arith.select %56, %45, %58 : vector<16x128xi1>, vector<16x128xbf16>
    %c0_i32_24 = arith.constant 0 : i32
    %60 = arith.sitofp %c0_i32_24 : i32 to bf16
    %61 = vector.shape_cast %54 : vector<1x128xi1> to vector<1x128xi1>
    %62 = vector.broadcast %61 : vector<1x128xi1> to vector<16x128xi1>
    %63 = vector.broadcast %60 : bf16 to vector<16x128xbf16>
    %64 = arith.select %62, %59, %63 : vector<16x128xi1>, vector<16x128xbf16>
    %c0_25 = arith.constant 0 : index
    %c256 = arith.constant 256 : index
    %65 = vector.load %arg8[%c0_25, %c256] : memref<16x384xbf16, #tpu.memory_space<vmem>>, vector<16x128xbf16>
    tpu.vector_store %arg8[%c0_25, %c256], %64 {strides = array<i32>} : memref<16x384xbf16, #tpu.memory_space<vmem>>, vector<16x128xbf16>,
    %c0_26 = arith.constant 0 : index
    %c0_27 = arith.constant 0 : index
    %66 = vector.load %arg8[%c0_26, %c0_27] : memref<16x384xbf16, #tpu.memory_space<vmem>>, vector<16x384xbf16>
    %c0_28 = arith.constant 0 : index
    %c0_29 = arith.constant 0 : index
    %c0_30 = arith.constant 0 : index
    %c0_31 = arith.constant 0 : index
    %67 = vector.load %arg5[%c0_28, %c0_29, %c0_30, %c0_31] : memref<2x2x8x16xbf16, #tpu.memory_space<vmem>>, vector<1x1x8x16xbf16>
    %68 = vector.shape_cast %67 : vector<1x1x8x16xbf16> to vector<8x16xbf16>
    %69 = vector.extract_strided_slice %66 {offsets = [0, 127], sizes = [16, 128], strides = [1, 1]} : vector<16x384xbf16> to vector<16x128xbf16>
    %cst_32 = arith.constant dense<0.000000e+00> : vector<8x128xf32>
    %70 = tpu.matmul %68, %69, %cst_32 {dimension_numbers = #tpu.dot_dimension_numbers<[1], [0], [0], [1], [0, 0, 1, 1], [], []>} : vector<8x16xbf16>, vector<16x128xbf16>, vector<8x128xf32> -> vector<8x128xf32>
    %c0_33 = arith.constant 0 : index
    %c0_34 = arith.constant 0 : index
    %71 = vector.load %arg6[%c0_33, %c0_34] : memref<8x1xf32, #tpu.memory_space<vmem>>, vector<8x1xf32>
    %72 = vector.broadcast %71 : vector<8x1xf32> to vector<8x128xf32>
    %73 = arith.addf %70, %72 : vector<8x128xf32>
    %c0_35 = arith.constant 0 : index
    %c1 = arith.constant 1 : index
    %c0_36 = arith.constant 0 : index
    %c0_37 = arith.constant 0 : index
    %74 = vector.load %arg5[%c0_35, %c1, %c0_36, %c0_37] : memref<2x2x8x16xbf16, #tpu.memory_space<vmem>>, vector<1x1x8x16xbf16>
    %75 = vector.shape_cast %74 : vector<1x1x8x16xbf16> to vector<8x16xbf16>
    %76 = vector.extract_strided_slice %66 {offsets = [0, 128], sizes = [16, 128], strides = [1, 1]} : vector<16x384xbf16> to vector<16x128xbf16>
    %cst_38 = arith.constant dense<0.000000e+00> : vector<8x128xf32>
    %77 = tpu.matmul %75, %76, %cst_38 {dimension_numbers = #tpu.dot_dimension_numbers<[1], [0], [0], [1], [0, 0, 1, 1], [], []>} : vector<8x16xbf16>, vector<16x128xbf16>, vector<8x128xf32> -> vector<8x128xf32>
    %78 = arith.addf %73, %77 : vector<8x128xf32>
    %79 = arith.truncf %78 : vector<8x128xf32> to vector<8x128xbf16>
    %c0_39 = arith.constant 0 : index
    %c0_40 = arith.constant 0 : index
    %c0_41 = arith.constant 0 : index
    %c0_42 = arith.constant 0 : index
    %80 = vector.load %arg7[%c0_39, %c0_40, %c0_41, %c0_42] : memref<1x2x8x128xbf16, #tpu.memory_space<vmem>>, vector<1x1x8x128xbf16>
    %81 = vector.shape_cast %80 : vector<1x1x8x128xbf16> to vector<8x128xbf16>
    %82 = vector.shape_cast %79 : vector<8x128xbf16> to vector<1x1x8x128xbf16>
    tpu.vector_store %arg7[%c0_39, %c0_40, %c0_41, %c0_42], %82 {strides = array<i32>} : memref<1x2x8x128xbf16, #tpu.memory_space<vmem>>, vector<1x1x8x128xbf16>,
    %c1_43 = arith.constant 1 : index
    %c0_44 = arith.constant 0 : index
    %c0_45 = arith.constant 0 : index
    %c0_46 = arith.constant 0 : index
    %83 = vector.load %arg5[%c1_43, %c0_44, %c0_45, %c0_46] : memref<2x2x8x16xbf16, #tpu.memory_space<vmem>>, vector<1x1x8x16xbf16>
    %84 = vector.shape_cast %83 : vector<1x1x8x16xbf16> to vector<8x16xbf16>
    %85 = vector.extract_strided_slice %66 {offsets = [0, 128], sizes = [16, 128], strides = [1, 1]} : vector<16x384xbf16> to vector<16x128xbf16>
    %cst_47 = arith.constant dense<0.000000e+00> : vector<8x128xf32>
    %86 = tpu.matmul %84, %85, %cst_47 {dimension_numbers = #tpu.dot_dimension_numbers<[1], [0], [0], [1], [0, 0, 1, 1], [], []>} : vector<8x16xbf16>, vector<16x128xbf16>, vector<8x128xf32> -> vector<8x128xf32>
    %c0_48 = arith.constant 0 : index
    %c0_49 = arith.constant 0 : index
    %87 = vector.load %arg6[%c0_48, %c0_49] : memref<8x1xf32, #tpu.memory_space<vmem>>, vector<8x1xf32>
    %88 = vector.broadcast %87 : vector<8x1xf32> to vector<8x128xf32>
    %89 = arith.addf %86, %88 : vector<8x128xf32>
    %c1_50 = arith.constant 1 : index
    %c1_51 = arith.constant 1 : index
    %c0_52 = arith.constant 0 : index
    %c0_53 = arith.constant 0 : index
    %90 = vector.load %arg5[%c1_50, %c1_51, %c0_52, %c0_53] : memref<2x2x8x16xbf16, #tpu.memory_space<vmem>>, vector<1x1x8x16xbf16>
    %91 = vector.shape_cast %90 : vector<1x1x8x16xbf16> to vector<8x16xbf16>
    %92 = vector.extract_strided_slice %66 {offsets = [0, 129], sizes = [16, 128], strides = [1, 1]} : vector<16x384xbf16> to vector<16x128xbf16>
    %cst_54 = arith.constant dense<0.000000e+00> : vector<8x128xf32>
    %93 = tpu.matmul %91, %92, %cst_54 {dimension_numbers = #tpu.dot_dimension_numbers<[1], [0], [0], [1], [0, 0, 1, 1], [], []>} : vector<8x16xbf16>, vector<16x128xbf16>, vector<8x128xf32> -> vector<8x128xf32>
    %94 = arith.addf %89, %93 : vector<8x128xf32>
    %95 = arith.truncf %94 : vector<8x128xf32> to vector<8x128xbf16>
    %c0_55 = arith.constant 0 : index
    %c1_56 = arith.constant 1 : index
    %c0_57 = arith.constant 0 : index
    %c0_58 = arith.constant 0 : index
    %96 = vector.load %arg7[%c0_55, %c1_56, %c0_57, %c0_58] : memref<1x2x8x128xbf16, #tpu.memory_space<vmem>>, vector<1x1x8x128xbf16>
    %97 = vector.shape_cast %96 : vector<1x1x8x128xbf16> to vector<8x128xbf16>
    %98 = vector.shape_cast %95 : vector<8x128xbf16> to vector<1x1x8x128xbf16>
    tpu.vector_store %arg7[%c0_55, %c1_56, %c0_57, %c0_58], %98 {strides = array<i32>} : memref<1x2x8x128xbf16, #tpu.memory_space<vmem>>, vector<1x1x8x128xbf16>,
    return
  }
  func.func @transform_0(%arg0: i32, %arg1: i32) -> (i32, i32, i32) {
    %c1_i32 = arith.constant 1 : i32
    %0 = arith.muli %arg1, %c1_i32 : i32
    %c1_i32_0 = arith.constant 1 : i32
    %1 = arith.subi %0, %c1_i32_0 : i32
    %c0_i32 = arith.constant 0 : i32
    %2 = arith.maxsi %1, %c0_i32 : i32
    %c0_i32_1 = arith.constant 0 : i32
    %c0_i32_2 = arith.constant 0 : i32
    return %arg0, %c0_i32_1, %2 : i32, i32, i32
  }
  func.func @transform_1(%arg0: i32, %arg1: i32) -> (i32, i32, i32) {
    %c0_i32 = arith.constant 0 : i32
    %c0_i32_0 = arith.constant 0 : i32
    return %arg0, %c0_i32, %arg1 : i32, i32, i32
  }
  func.func @transform_2(%arg0: i32, %arg1: i32) -> (i32, i32, i32) {
    %c1_i32 = arith.constant 1 : i32
    %0 = arith.addi %arg1, %c1_i32 : i32
    %c1_i32_0 = arith.constant 1 : i32
    %1 = arith.muli %0, %c1_i32_0 : i32
    %c0_i32 = arith.constant 0 : i32
    %2 = arith.minsi %1, %c0_i32 : i32
    %c0_i32_1 = arith.constant 0 : i32
    %c0_i32_2 = arith.constant 0 : i32
    return %arg0, %c0_i32_1, %2 : i32, i32, i32
  }
  func.func @transform_3(%arg0: i32, %arg1: i32) -> (i32, i32, i32, i32) {
    %c0_i32 = arith.constant 0 : i32
    %c0_i32_0 = arith.constant 0 : i32
    %c0_i32_1 = arith.constant 0 : i32
    %c0_i32_2 = arith.constant 0 : i32
    %c0_i32_3 = arith.constant 0 : i32
    return %c0_i32, %c0_i32_0, %c0_i32_1, %c0_i32_2 : i32, i32, i32, i32
  }
  func.func @transform_4(%arg0: i32, %arg1: i32) -> (i32, i32) {
    %c0_i32 = arith.constant 0 : i32
    %c0_i32_0 = arith.constant 0 : i32
    %c0_i32_1 = arith.constant 0 : i32
    return %c0_i32, %c0_i32_0 : i32, i32
  }
  func.func @transform_5(%arg0: i32, %arg1: i32) -> (i32, i32, i32, i32) {
    %c0_i32 = arith.constant 0 : i32
    %c0_i32_0 = arith.constant 0 : i32
    %c0_i32_1 = arith.constant 0 : i32
    return %arg0, %c0_i32, %c0_i32_0, %arg1 : i32, i32, i32, i32
  }
}

</mosaic_0001>

<bundles_post_ra>
// kernel: tpu_custom_call.1
= control target key start
LH: loop header
LB: loop body
LE: loop exit
PB: predicated region body
PF: predicated region fallthrough
CT: control target
= control target key end

     0   :  { %s1536_s0 = inlined_call_operand.hbm [shape: bf16[2,16,128], index: 0, kind: input, shape index: {}]   ;;  %s1537_s1 = inlined_call_operand.hbm [shape: bf16[2,16,128], index: 1, kind: input, shape index: {}]   ;;  %s1538_s2 = inlined_call_operand.vmem [shape: bf16[2,16,128], index: 2, kind: input, shape index: {}]   ;;  %s1539_s3 = inlined_call_operand.hbm [shape: bf16[2,2,8,16], index: 3, kind: input, shape index: {}]   ;;  %s1540_s4 = inlined_call_operand.vmem [shape: f32[8,1], index: 4, kind: input, shape index: {}]   ;;  %s1541_s5 = inlined_call_operand.hbm [shape: bf16[2,2,8,128], index: 5, kind: output, shape index: {}]  }
   0x1   :  { %1551 = sst [smem:[#allocation16_spill]] %s1536_s0 }
   0x2   :  { %1552 = sst [smem:[#allocation17_spill]] %s1539_s3 }
   0x3   :  { %10 = vsyncpa [#allocation4], 0 }
   0x4   :  { %12 = vsyncpa [#allocation4 + $0x1], 0 }
   0x5   :  { %13 = vsyncpa [#allocation7], 0 }
   0x6   :  { %15 = vsyncpa [#allocation7 + $0x1], 0 }
   0x7   :  { %16 = vsyncpa [#allocation5], 0 }
   0x8   :  { %18 = vsyncpa [#allocation5 + $0x1], 0  ;;  %s1223_s18 = smov 0   ;;  %s1225_s19 = smov 0  }
   0x9   :  { %s1227_s20 = smov 0   ;;  %s1229_s21 = smov 0  }
   0xa   :  { %s1231_s22 = smov 0   ;;  %s1233_s23 = smov 0  }
   0xb LB: > { %1553 = sst [smem:[#allocation14_spill]] %s1174_s22  ;;  %s1254_s24 = sadd.s32 4294967295, %s1178_s23   ;;  %s1178_s23 = sphi %s1233_s23, %s24_s23   ;;  %s1174_s22 = sphi %s1231_s22, %s1576_s22   ;;  %s1170_s21 = sphi %s1229_s21, %s1575_s21   ;;  %s1166_s20 = sphi %s1227_s20, %s1579_s20   ;;  %s1162_s19 = sphi %s1225_s19, %s1578_s19   ;;  %s1158_s18 = sphi %s1223_s18, %s1577_s18  }
   0xc   : > { %s835_s25 = sadd.s32 4294967294, %s1178_s23   ;;  %p64_p0 = scmp.ne.s32.totalorder %s1162_s19, %s1158_s18 }
   0xd   : > { %p1542_p1 = scmp.eq.s32.totalorder %s1254_s24, 0  ;;  %p200_p3 = scmp.eq.s32.totalorder %s835_s25, 1 }
   0xe   : > { %p836_p5 = scmp.ge.s32.totalorder %s1178_s23, 1  ;;  %p207_p7 = scmp.lt.s32.totalorder %s1178_s23, 3 }
   0xf   : > { %p1263_p4 = por %p1542_p1, %p64_p0  ;;  %p1268_p6 = por %p200_p3, %p64_p0 }
  0x10   : > { %p1273_p8 = pnand %p836_p5, %p207_p7  ;;  %s1180_s29 = smov [#allocation8]  }
  0x11   : > { %s1554_s26 = scalar_select %p1263_p4, 1, 0 }
  0x12   : > { %s1555_s27 = scalar_select %p1268_p6, 1, 0 }
  0x13   : > { %s1556_s28 = scalar_select %p1273_p8, 1, 0 }
  0x14   : > { %s219_s30 = sshll.u32 %s1180_s29, 4  ;;  %p921_p9 = pneg %p1273_p8  ;;  %s220_s30 = int_to_ptr.vmem [resolvable:$true] %s219_s30 }
  0x15   : > { %s36_s7 = sadd.s32 1, %s1174_s22  ;;  %s1558_s3 = sld [smem:[#allocation17_spill]] }
  0x16   : > { %p1282_p11 = pnand %p921_p9, %p1542_p1 }
  0x18   : > { %p1002_p13 = pneg %p1282_p11 }
  0x1b   : > { %s1000_s10 = scalar_lea.hbm %s1558_s3, 256 }
  0x1c   : > { %p1001_p12 = scmp.ne.s32.totalorder %s1558_s3, %s1000_s10  ;;  %p1007_p5 = scmp.lt.u32.totalorder %s1000_s10, %s1558_s3 }
  0x1e   : > { %p1003_p0 = pnand %p1002_p13, %p1001_p12 }
  0x20   : > { %p1004_p3 = pneg %p1003_p0 }
  0x22   : > { %p1009_p7 = pnand %p1007_p5, %p1004_p3 }
  0x24   : > { %1012 = shalt.err (!%p1009_p7)
}
  0x25   : > { %s1013_s15 = scalar_lea.vmem %s220_s30, 256  ;;  %p1021_p2 = scmp.lt.s32.totalorder %s220_s30, %s220_s30 }
  0x26   : > { %p1014_p9 = scmp.ne.s32.totalorder %s220_s30, %s1013_s15  ;;  %p1022_p6 = scmp.lt.s32.totalorder %s1013_s15, %s1013_s15 }
  0x28   : > { %p1016_p10 = pnand %p1014_p9, %p1002_p13  ;;  %p1023_p4 = por %p1022_p6, %p1021_p2 }
  0x2a   : > { %p1017_p1 = pneg %p1016_p10 }
  0x2c   : > { %p1024_p8 = pnand %p1023_p4, %p1017_p1 }
  0x2e   : > { %1027 = shalt.err (!%p1024_p8)
}
  0x2f   : > { %s1545_s16 = smov 64   ;;  %s1547_s17 = smov 4  }
  0x30   : > { %924 = dma.hbm_to_vmem [thread:$0]  (!%p1282_p11), %s1558_s3, 256, %s220_s30, [#allocation7], %s1545_s16, %s1545_s16, %s1547_s17  }
  0x31   : > { %p38_p1 = scmp.ge.s32.totalorder %s36_s7, 2  ;;  %s51_s8 = sadd.s32 1, %s1166_s20 }
  0x32   : > { %p58_p2 = scmp.ne.s32.totalorder %s1166_s20, %s1162_s19  ;;  %p59_p4 = scmp.eq.s32.totalorder %s1178_s23, 0 }
  0x33   : > { %s1581_s7 = smov (%p38_p1, %s36_s7), 0  ;;  %p1561_p8 = scmp.eq.s32.totalorder %s1254_s24, 1 }
  0x34   : > { %1559 = sst [smem:[#allocation15_spill]] %s1581_s7  ;;  %p1312_p6 = por %p59_p4, %p58_p2 }
  0x35   : > { %p1318_p10 = por %p1561_p8, %p58_p2  ;;  %s46_s10 = ssub.s32 %s1174_s22, %s1581_s7 }
  0x36   : > { %p937_p12 = scmp.lt.s32.totalorder %s1178_s23, 2  ;;  %p49_p11 = scmp.eq.s32.totalorder %s46_s10, 0 }
  0x37   : > { %s236_s30 = sand.u32 1, %s1166_s20   ;;  %s865_s13 = sshll.u32 %s1174_s22, 7 }
  0x38   : > { %s839_s11 = sshll.u32 %s236_s30, 3  ;;  %s1563_s0 = sld [smem:[#allocation16_spill]] }
  0x39   : > { %s1327_s12 = scalar_select %p49_p11, %s1166_s20, %s51_s8  }
  0x3a   : > { %s240_s29 = scalar_lea.vmem [#allocation3], %s839_s11  ;;  %p1339_p13 = pnand %p937_p12, %p1312_p6 }
  0x3b   : > { %s251_s16 = sshll.u32 %s240_s29, 4  ;;  %s1346_s14 = scalar_lea.hbm %s1537_s1, %s865_s13  ;;  %s1335_s16 = int_to_ptr.vmem [resolvable:$true] %s251_s16 }
  0x3c   : > { %s265_s15 = scalar_lea.vmem [#allocation6], %s839_s11  ;;  %s1350_s7 = scalar_lea.sflag [#allocation4], %s236_s30 }
  0x3d   : > { %s1348_s3 = sshll.u32 %s265_s15, 4  ;;  %p1030_p3 = pneg %p1339_p13  ;;  %s1382_s3 = int_to_ptr.vmem [resolvable:$true] %s1348_s3 }
  0x3e   : > { %s1333_s25 = scalar_lea.hbm %s1563_s0, %s865_s13  ;;  %s1033_s17 = scalar_lea.hbm %s1563_s0, 256 }
  0x3f   : > { %s1028_s29 = scalar_lea.hbm %s1333_s25, 128  ;;  %p1034_p9 = scmp.lt.u32.totalorder %s1333_s25, %s1563_s0 }
  0x40   : > { %p1029_p0 = scmp.ne.s32.totalorder %s1333_s25, %s1028_s29  ;;  %p1035_p1 = scmp.lt.u32.totalorder %s1033_s17, %s1028_s29 }
  0x41   : > { %p1037_p4 = scmp.lt.u32.totalorder %s1028_s29, %s1333_s25 }
  0x42   : > { %p1031_p5 = pnand %p1030_p3, %p1029_p0  ;;  %p1036_p2 = por %p1035_p1, %p1034_p9 }
  0x44   : > { %p1032_p7 = pneg %p1031_p5  ;;  %p1038_p6 = por %p1037_p4, %p1036_p2 }
  0x46   : > { %p1039_p8 = pnand %p1038_p6, %p1032_p7 }
  0x48   : > { %1042 = shalt.err (!%p1039_p8)
}
  0x49   : > { %s1043_s30 = scalar_lea.vmem %s1335_s16, 128  ;;  %s1183_s22 = smov [#allocation3]  }
  0x4a   : > { %p1044_p12 = scmp.ne.s32.totalorder %s1335_s16, %s1043_s30  ;;  %s1048_s11 = sshll.u32 %s1183_s22, 4  ;;  %s1049_s11 = int_to_ptr.vmem [resolvable:$false] %s1048_s11 }
  0x4b   : > { %s1050_s15 = scalar_lea.vmem %s1049_s11, 256  ;;  %p1051_p5 = scmp.lt.s32.totalorder %s1335_s16, %s1049_s11 }
  0x4c   : > { %p1046_p11 = pnand %p1044_p12, %p1030_p3  ;;  %p1052_p9 = scmp.lt.s32.totalorder %s1050_s15, %s1043_s30 }
  0x4e   : > { %p1047_p0 = pneg %p1046_p11  ;;  %p1053_p1 = por %p1052_p9, %p1051_p5 }
  0x50   : > { %p1054_p2 = pnand %p1053_p1, %p1047_p0 }
  0x52   : > { %1057 = shalt.err (!%p1054_p2)
}
  0x53   : > { %s1565_s29 = smov 4   ;;  %s1566_s9 = smov 64  }
  0x54   : > { %928 = dma.hbm_to_vmem [thread:$0]  (!%p1339_p13), %s1333_s25, 128, %s1335_s16, %s1350_s7, %s1566_s9, %s1566_s9, %s1565_s29  }
  0x55   : > { %s261_s17 = sand.u32 1, %s1178_s23   ;;  %s1058_s13 = scalar_lea.hbm %s1346_s14, 128 }
  0x56   : > { %s1385_s8 = scalar_lea.sflag [#allocation7], %s261_s17  ;;  %p1059_p7 = scmp.ne.s32.totalorder %s1346_s14, %s1058_s13 }
  0x57   : > { %s1063_s11 = scalar_lea.hbm %s1537_s1, 256  ;;  %p1064_p8 = scmp.lt.u32.totalorder %s1346_s14, %s1537_s1 }
  0x58   : > { %p1061_p4 = pnand %p1059_p7, %p1030_p3  ;;  %p1065_p12 = scmp.lt.u32.totalorder %s1063_s11, %s1058_s13 }
  0x59   : > { %p1067_p0 = scmp.lt.u32.totalorder %s1058_s13, %s1346_s14 }
  0x5a   : > { %p1062_p6 = pneg %p1061_p4  ;;  %p1066_p11 = por %p1065_p12, %p1064_p8 }
  0x5c   : > { %p1068_p5 = por %p1067_p0, %p1066_p11 }
  0x5e   : > { %p1069_p9 = pnand %p1068_p5, %p1062_p6 }
  0x60   : > { %1072 = shalt.err (!%p1069_p9)
}
  0x61   : > { %s1073_s7 = scalar_lea.vmem %s1382_s3, 128  ;;  %s1184_s16 = smov [#allocation6]  }
  0x62   : > { %p1074_p1 = scmp.ne.s32.totalorder %s1382_s3, %s1073_s7  ;;  %s1078_s25 = sshll.u32 %s1184_s16, 4  ;;  %s1079_s25 = int_to_ptr.vmem [resolvable:$false] %s1078_s25 }
  0x63   : > { %s1080_s0 = scalar_lea.vmem %s1079_s25, 256  ;;  %p1081_p4 = scmp.lt.s32.totalorder %s1382_s3, %s1079_s25 }
  0x64   : > { %p1076_p2 = pnand %p1074_p1, %p1030_p3  ;;  %p1082_p8 = scmp.lt.s32.totalorder %s1080_s0, %s1073_s7 }
  0x66   : > { %p1077_p7 = pneg %p1076_p2  ;;  %p1083_p12 = por %p1082_p8, %p1081_p4 }
  0x68   : > { %p1084_p11 = pnand %p1083_p12, %p1077_p7 }
  0x6a   : > { %1087 = shalt.err (!%p1084_p11)
}
  0x6b   : > { %931 = dma.hbm_to_vmem [thread:$0]  (!%p1339_p13), %s1346_s14, 128, %s1382_s3, %s1385_s8, %s1566_s9, %s1566_s9, %s1565_s29  }
  0x6c   : > { %p1567_p3 = scmp.ne.s32.totalorder %s1556_s28, 0 }
  0x6d   : > { %s1417_s17 = sand.u32 (!%p1567_p3), 1, %s1162_s19   ;;  %p1568_p6 = scmp.ne.s32.totalorder (!%p1567_p3), %s1554_s26, 0 }
  0x6e   : > { %302 = sbr.rel (%p1567_p3) target bundleno = 501 (0x1f5), region = 40  ;;  %s1420_s13 = sshll.u32 (!%p1567_p3), %s1417_s17, 3 }
  0x6f   : > { %s305_s10 = scalar_lea.sflag (!%p1567_p3), [#allocation4], %s1417_s17  ;;  %s308_s30 = scalar_lea.vmem (!%p1567_p3), [#allocation3], %s1420_s13 }
  0x75   : > { %1141 = dma.done.wait (%p1568_p6), %s305_s10, 128  }
  0x76   : > { %1143 = vsyncadd (%p1568_p6), %s305_s10, 4294967168  ;;  %s313_s3 = sand.u32 1, %s1254_s24   ;;  %s317_s14 = scalar_lea.vmem [#allocation6], %s1420_s13 }
  0x77   : > { %s314_s28 = scalar_lea.sflag [#allocation7], %s313_s3 }
  0x78   : > { %1145 = dma.done.wait (%p1568_p6), %s314_s28, 128  }
  0x79   : > { %1147 = vsyncadd (%p1568_p6), %s314_s28, 4294967168  ;;  %p1569_p13 = scmp.eq.s32.totalorder %s1254_s24, 0 }
  0x7b   : > { %1149 = dma.done.wait (%p1569_p13), [#allocation7], 256   ;;  %p1570_p0 = pmov %p1569_p13 }
  0x7c   : > { %v387_v0 = vlaneseq  ;;  %p370_p5 = scmp.lt.s32.totalorder %s1170_s21, 1  ;;  %v1185_v1 = vmov 0.0   ;;  %vm1186_vm0 = vmmov 0   ;;  %v412_v3 = vld [vmem:[%s317_s14] sm:$0xf]  ;;  %s1187_s22 = smov 127  }
  0x7d   : > { %1151 = vsyncadd (%p1570_p0), [#allocation7], 4294967040  ;;  %889 = vmatprep.subr.bf16.mxu1 %v1185_v1  ;;  %891 = vmatprep.mubr.msk.bf16.mxu1 %vm1186_vm0, %v1185_v1  ;;  %v413_v4 = vld [vmem:[%s317_s14 + $0x4] sm:$0xf]  ;;  %v384_v5 = vld [vmem:[%s308_s30] sm:$0xf] }
  0x7e   : > { %v388_v2 = vand.u32 127, %v387_v0  ;;  %877 = vmatprep.subr.bf16.mxu0 %v1185_v1  ;;  %879 = vmatprep.mubr.msk.bf16.mxu0 %vm1186_vm0, %v1185_v1  ;;  %s371_s24 = scalar_select %p370_p5, %s1170_s21, 1  ;;  %vm419_vm2 = vcmp.ge.bf16.partialorder %v412_v3, 0  ;;  %vm420_vm3 = vcmp.ge.bf16.partialorder %v413_v4, 0  ;;  %v421_v6 = vmul.bf16 1036860877, %v412_v3  ;;  %vm1455_vm6 = vmpackc.low %vm1186_vm0, %vm1186_vm0 }
  0x7f   : > { %v422_v7 = vmul.bf16 1036860877, %v413_v4  ;;  %v385_v8 = vld [vmem:[%s308_s30 + $0x4] sm:$0xf]  ;;  %vm394_vm5 = vcmp.ge.bf16.partialorder %v384_v5, 0  ;;  %vm482_vm10 = vcmask 130048  }
  0x80   : > { %vm417_vm1 = vcmp.lt.s32.totalorder %v388_v2, 16  ;;  %s867_s26 = sshll.u32 %s371_s24, 3  ;;  %v396_v9 = vmul.bf16 1036860877, %v384_v5  ;;  %v423_v11 = vsel %vm419_vm2, %v412_v3, %v421_v6  ;;  %vm395_vm7 = vcmp.ge.bf16.partialorder %v385_v8, 0  ;;  %s1188_s11 = smov 1  }
  0x81   : > { %s377_s8 = scalar_lea.vmem %s1538_s2, %s867_s26  ;;  %vm427_vm4 = vmpackc.low %vm417_vm1, %vm417_vm1  ;;  %v424_v12 = vsel %vm420_vm3, %v413_v4, %v422_v7  ;;  %v397_v13 = vmul.bf16 1036860877, %v385_v8  ;;  %v575_v26 = vld [vmem:[#allocation8 + $0x8] sm:$0xf]  ;;  %v576_v32 = vld [vmem:[%s1540_s4] sm:$0xff]  ;;  %v1189_v33 = vmov 0  }
  0x82   : > { %v437_v14 = vld [vmem:[%s377_s8] sm:$0xf]  ;;  %v428_v15 = vsel %vm427_vm4, %v423_v11, 0  ;;  %v429_v16 = vsel %vm427_vm4, %v424_v12, 0  ;;  %v398_v17 = vsel %vm394_vm5, %v384_v5, %v396_v9  ;;  %v438_v18 = vld [vmem:[%s377_s8 + $0x4] sm:$0xf]  ;;  %999 = vset.pattern.permute.xlu1 %v1189_v33  ;;  %998 = vset.pattern.permute.xlu0 %v1189_v33 }
  0x83   : > { %vm445_vm8 = vcmp.ge.bf16.partialorder %v437_v14, 0  ;;  %v853_v19 = vcombine.low %v428_v15, %v429_v16  ;;  %v399_v20 = vsel %vm395_vm7, %v385_v8, %v397_v13  ;;  %v403_v21 = vsel %vm1455_vm6, %v398_v17, 0  ;;  %v626_v40 = vld [vmem:[#allocation8 + $0xc] sm:$0xf]  ;;  %v466_v41 = vld [vmem:[#allocation8] sm:$0xf] }
  0x84   : > { %vm446_vm9 = vcmp.ge.bf16.partialorder %v438_v18, 0  ;;  %v404_v22 = vsel %vm1455_vm6, %v399_v20, 0  ;;  %v447_v23 = vmul.bf16 1036860877, %v437_v14  ;;  %v448_v24 = vmul.bf16 1036860877, %v438_v18 }
  0x85   : > { %628 = vrot.lane.b32.xlu1 %v853_v19, %s1187_s22  ;;  %v852_v25 = vcombine.low %v403_v21, %v404_v22  ;;  %890 = vmatpush3.bf16.msra.mxu1 %v853_v19  ;;  %vm632_vm11 = vcmask 1039360   ;;  %vm479_vm12 = vcmask 7168   ;;  %v527_v42 = vld [vmem:[#allocation8 + $0x4] sm:$0xf]  ;;  %s363_s16 = scalar_lea.vmem [#allocation9], %s1420_s13  ;;  %s868_s0 = sshll.u32 %s1170_s21, 7 }
  0x86   : > { %v449_v27 = vsel %vm445_vm8, %v437_v14, %v447_v23  ;;  %v450_v28 = vsel %vm446_vm9, %v438_v18, %v448_v24  ;;  %895 = vmatprep.subr.bf16.mxu1 %v1185_v1  ;;  %s697_s25 = sshll.u32 %s363_s16, 4  ;;  %s1487_s3 = scalar_lea.hbm %s1541_s5, %s868_s0  ;;  %s1482_s25 = int_to_ptr.vmem [resolvable:$true] %s697_s25 }
  0x87   : > { %475 = vrot.lane.b32.xlu0 %v852_v25, %s1188_s11  ;;  %v454_v29 = vsel %vm1455_vm6, %v449_v27, 0  ;;  %v455_v30 = vsel %vm1455_vm6, %v450_v28, 0  ;;  %s683_s13 = scalar_lea.sflag [#allocation5], %s1417_s17  ;;  %s1088_s28 = scalar_lea.vmem %s1482_s25, 128 }
  0x88   : > { %v854_v31 = vcombine.low %v454_v29, %v455_v30  ;;  %892 = vmatmul.mubr.msk.bf16.vlgmr.msra.gmra.mrb[0].mxu1 %vm482_vm10, %v575_v26  ;;  %p1089_p9 = scmp.ne.s32.totalorder %s1482_s25, %s1088_s28  ;;  %s1190_s21 = smov [#allocation9]  }
  0x89   : > { %897 = vmatprep.mubr.msk.bf16.mxu1 %vm1186_vm0, %v1185_v1  ;;  %s1092_s14 = sshll.u32 %s1190_s21, 4  ;;  %s1093_s14 = int_to_ptr.vmem [resolvable:$false] %s1092_s14 }
  0x8a   : > { %630 = vrot.lane.b32.xlu1 %v854_v31, %s1187_s22  ;;  %p1090_p1 = pnand %p1089_p9, %p1318_p10  ;;  %s1094_s24 = scalar_lea.vmem %s1093_s14, 256 }
  0x8b   : > { %477 = vrot.lane.b32.xlu0 %v853_v19, %s1188_s11  ;;  %p1095_p7 = scmp.lt.s32.totalorder %s1482_s25, %s1093_s14  ;;  %p1096_p4 = scmp.lt.s32.totalorder %s1094_s24, %s1088_s28 }
  0x8c   : > { %p1091_p2 = pneg %p1090_p1 }
  0x8d   : > { %p1097_p8 = por %p1096_p4, %p1095_p7 }
  0x8e   : > { %579 = vperm.xlu1 %999, %v576_v32  }
  0x8f   : > { %470 = vperm.xlu0 %998, %v576_v32   ;;  %p1098_p12 = pnand %p1097_p8, %p1091_p2 }
  0xf7   : > { %v629_v34 = vpop.permute.xlu1 %628 }
  0xf9   : > { %v476_v35 = vpop.permute.xlu0 %475 }
  0xfc   : > { %v631_v36 = vpop.permute.xlu1 %630 }
  0xfd   : > { %v633_v37 = vsel %vm632_vm11, %v629_v34, %v631_v36  ;;  %v478_v38 = vpop.permute.xlu0 %477 }
  0xfe   : > { %v480_v39 = vsel %vm479_vm12, %v476_v35, %v478_v38  ;;  %896 = vmatpush3.bf16.msra.mxu1 %v633_v37 }
  0xff   : > { %878 = vmatpush3.bf16.msra.mxu0 %v480_v39 }
 0x100   : > { %883 = vmatprep.subr.bf16.mxu0 %v1185_v1 }
 0x101   : > { %898 = vmatmul.mubr.msk.bf16.vlgmr.msra.gmra.mrb[0].mxu1 %vm482_vm10, %v626_v40 }
 0x102   : > { %880 = vmatmul.mubr.msk.bf16.vlgmr.msra.gmra.mrb[0].mxu0 %vm482_vm10, %v466_v41 }
 0x103   : > { %884 = vmatpush3.bf16.msra.mxu0 %v853_v19  ;;  %885 = vmatprep.mubr.msk.bf16.mxu0 %vm1186_vm0, %v1185_v1 }
 0x10d   : > { %v580_v43 = vpop.permute.xlu1 %579 }
 0x10e   : > { %886 = vmatmul.mubr.msk.bf16.vlgmr.msra.gmra.mrb[0].mxu0 %vm482_vm10, %v527_v42  ;;  %v471_v50 = vpop.permute.xlu0 %470 }
 0x1d4   : > { %v672_v44 = vpop.f32.mrb[0].mxu1 }
 0x1d5   : > { %v902_v45 = vadd.f32 %v672_v44, %v580_v43  ;;  %v899_v46 = vpop.f32.mrb[1].mxu1 }
 0x1d6   : > { %v675_v47 = vpop.f32.mrb[2].mxu1 }
 0x1d7   : > { %v679_v48 = vpack.c.bf16 %v902_v45, %v902_v45  ;;  %v900_v49 = vpop.f32.mrb[3].mxu1 }
 0x1d9   : > { %859 = vst [vmem:[%s363_s16 + $0x4] sm:$0xf] %v679_v48 }
 0x1e1   : > { %v565_v51 = vpop.f32.mrb[0].mxu0 }
 0x1e2   : > { %v901_v52 = vadd.f32 %v565_v51, %v471_v50  ;;  %v887_v53 = vpop.f32.mrb[1].mxu0 }
 0x1e3   : > { %v568_v54 = vpop.f32.mrb[2].mxu0 }
 0x1e4   : > { %v572_v55 = vpack.c.bf16 %v901_v52, %v901_v52  ;;  %v888_v56 = vpop.f32.mrb[3].mxu0 }
 0x1e6   : > { %573 = vst [vmem:[%s363_s16] sm:$0xf] %v572_v55 }
 0x1e7   : > { %1101 = shalt.err (!%p1098_p12)
}
 0x1e8   : > { %s1102_s26 = scalar_lea.hbm %s1487_s3, 128  ;;  %s1106_s8 = scalar_lea.hbm %s1541_s5, 256 }
 0x1e9   : > { %p1103_p11 = scmp.ne.s32.totalorder %s1487_s3, %s1102_s26  ;;  %p1107_p13 = scmp.lt.u32.totalorder %s1487_s3, %s1541_s5 }
 0x1ea   : > { %p1108_p0 = scmp.lt.u32.totalorder %s1106_s8, %s1102_s26  ;;  %p1110_p9 = scmp.lt.u32.totalorder %s1102_s26, %s1487_s3 }
 0x1eb   : > { %p1104_p3 = pnand %p1103_p11, %p1318_p10 }
 0x1ec   : > { %p1109_p5 = por %p1108_p0, %p1107_p13 }
 0x1ed   : > { %p1105_p6 = pneg %p1104_p3 }
 0x1ee   : > { %p1111_p1 = por %p1110_p9, %p1109_p5 }
 0x1f0   : > { %p1112_p2 = pnand %p1111_p1, %p1105_p6 }
 0x1f2   : > { %1115 = shalt.err (!%p1112_p2)
}
 0x1f3   : > { %s1191_s15 = smov 64   ;;  %s1192_s7 = smov 4  }
 0x1f4   : > { %919 = dma.vmem_to_hbm [thread:$0]  (%p1318_p10), %s1482_s25, 128, %s1487_s3, %s683_s13, %s1191_s15, %s1191_s15, %s1192_s7  }
 0x1f5 PF: > { %s712_s16 = sand.u32 1, %s1158_s18   ;;  %p1573_p7 = scmp.ne.s32.totalorder %s1555_s27, 0 }
 0x1f6   : > { %p1574_p4 = scmp.ge.s32.totalorder %s1178_s23, 2  ;;  %s713_s0 = scalar_lea.sflag [#allocation5], %s712_s16 }
 0x1f8   : > { %p933_p8 = pnand %p1574_p4, %p1573_p7 }
 0x1fa   : > { %1153 = dma.done.wait (!%p933_p8), %s713_s0, 128  }
 0x1fb   : > { %1155 = vsyncadd (!%p933_p8), %s713_s0, 4294967168  ;;  %s24_s23 = sadd.s32 1, %s1178_s23   ;;  %s1575_s21 = sld [smem:[#allocation14_spill]] }
 0x1fc   : > { %p21_p12 = scmp.ge.s32.totalorder %s24_s23, 4   ;;  %s1576_s22 = sld [smem:[#allocation15_spill]] }
 0x1fd   : > { %s1577_s18 = smov %s1162_s19  ;;  %s1578_s19 = smov %s1166_s20 }
 0x1fe   : > { %s1579_s20 = smov %s1327_s12  ;;  %23 = sbr.rel (!%p21_p12) target bundleno = 11 (0xb), region = 109 }
 0x205   :  { %718 = vsyncpa [#allocation4], 1 }
 0x206   :  { %720 = vsyncpa [#allocation4 + $0x1], 1 }
 0x207   :  { %721 = vsyncpa [#allocation7], 1 }
 0x208   :  { %723 = vsyncpa [#allocation7 + $0x1], 1 }
 0x209   :  { %724 = vsyncpa [#allocation5], 1 }
 0x20a   :  { %726 = vsyncpa [#allocation5 + $0x1], 1 }

</bundles_post_ra>
